<compile_context>
chip_gen: v6e
topology: v6e:2x2x1
jax: 0.10.0
libtpu: 0.0.40
codegen_flags: <defaults>
</compile_context>

<pallas_src>
import numpy as np
import jax
import jax.numpy as jnp
from jax import lax
from jax.experimental import pallas as pl
from jax.experimental.pallas import tpu as pltpu

LANE = 128  # embedding dim is zero-padded to a multiple of this (lane width)


def _softplus(x):
    # softplus(x) == -log(sigmoid(-x)); numerically stable for large |x|.
    return jnp.maximum(x, 0.0) + jnp.log(1.0 + jnp.exp(-jnp.abs(x)))


# ----------------------------------------------------------------------------
# Fused Pallas kernel: one grid step per relation.
# ----------------------------------------------------------------------------
def _fused_kg_neg_loss_kernel(head_ref, tail_ref, relvec_ref, bias_ref,
                              neg_ref, mask_ref, out_ref):
    head = head_ref[0]      # (B, Ep)  gathered head-entity embeddings
    tail = tail_ref[0]      # (B, Ep)  gathered tail-entity embeddings
    relv = relvec_ref[0]    # (1, Ep)  relation translation vector
    bias = bias_ref[0]      # (B, 1)   gathered relation bias
    neg = neg_ref[0]        # (S, Ep)  negative-sample tail embeddings
    mask = mask_ref[0]      # (B, 1)   1.0 for valid rows (tail_idx >= 0)

    example = head + relv                                                # (B, Ep)

    # Positive logits / loss: rowwise <example, tail> + bias
    pos_logits = jnp.sum(example * tail, axis=-1, keepdims=True) + bias  # (B, 1)
    pos_loss = _softplus(-pos_logits)                                    # == -log(sigmoid(x))

    # Negative logits / loss: example @ neg^T on the MXU (contract E of both
    # operands directly, no explicit transpose/relayout).
    neg_logits = lax.dot_general(
        example, neg,
        dimension_numbers=(((1,), (1,)), ((), ())),
        preferred_element_type=jnp.float32) + bias                       # (B, S)
    neg_loss = jnp.sum(_softplus(neg_logits), axis=-1, keepdims=True)    # (B, 1)

    # Masked mean over valid rows (== torch boolean-indexing + mean), guarded.
    per_example = (pos_loss + neg_loss) * mask                           # (B, 1)
    count = jnp.sum(mask, keepdims=True)                                 # (1, 1)
    valid = (count > 0.0).astype(jnp.float32)                            # (1, 1)
    loss = jnp.sum(per_example, keepdims=True) / jnp.maximum(count, 1.0)

    # L2 regularization: Frobenius norms of the gathered embeddings; invalid
    # rows contribute 0; relation with no valid rows contributes 0 overall.
    h2 = jnp.sum(head * head * mask, keepdims=True)
    t2 = jnp.sum(tail * tail * mask, keepdims=True)
    n2 = jnp.sum(neg * neg, keepdims=True)
    reg = (jnp.sqrt(h2) + jnp.sqrt(t2) + jnp.sqrt(n2)) * valid           # (1, 1)

    # Pack both scalars into one full, lane-dense (8,128) tile: rows 0..3 carry
    # loss, rows 4..7 carry reg (no masked single-element stores).
    row = lax.broadcasted_iota(jnp.int32, (8, LANE), 0)
    sel = (row < 4).astype(jnp.float32)                                  # (8, 128)
    out_ref[0] = sel * loss + (1.0 - sel) * reg


def fused_kg_neg_loss_pallas(head, tail, relvec, bias, neg, mask):
    """head/tail: (R,B,Ep), relvec: (R,1,Ep), bias/mask: (R,B,1), neg: (R,S,Ep)."""
    R, B, Ep = head.shape
    S = neg.shape[1]
    out = pl.pallas_call(
        _fused_kg_neg_loss_kernel,
        grid=(R,),
        in_specs=[
            pl.BlockSpec((1, B, Ep), lambda r: (r, 0, 0)),   # head
            pl.BlockSpec((1, B, Ep), lambda r: (r, 0, 0)),   # tail
            pl.BlockSpec((1, 1, Ep), lambda r: (r, 0, 0)),   # relation vector
            pl.BlockSpec((1, B, 1), lambda r: (r, 0, 0)),    # relation bias
            pl.BlockSpec((1, S, Ep), lambda r: (r, 0, 0)),   # negative samples
            pl.BlockSpec((1, B, 1), lambda r: (r, 0, 0)),    # valid-row mask
        ],
        out_specs=pl.BlockSpec((1, 8, LANE), lambda r: (r, 0, 0)),
        out_shape=jax.ShapeDtypeStruct((R, 8, LANE), jnp.float32),
        compiler_params=pltpu.CompilerParams(
            dimension_semantics=("parallel",)),
    )(head, tail, relvec, bias, neg, mask)
    loss_per_rel = out[:, 0, 0]   # rows 0..3 = loss
    reg_per_rel = out[:, 4, 0]    # rows 4..7 = reg
    return loss_per_rel, reg_per_rel


def fused_kg_neg_loss_ref(head, tail, relvec, bias, neg, mask):
    """Pure-JAX reference mirroring the torch kg_neg_loss (masked, per relation)."""
    example = head + relvec
    pos_logits = jnp.sum(example * tail, axis=-1, keepdims=True) + bias
    pos_loss = _softplus(-pos_logits)
    neg_logits = jnp.einsum('rbe,rse->rbs', example, neg,
                            preferred_element_type=jnp.float32) + bias
    neg_loss = jnp.sum(_softplus(neg_logits), axis=-1, keepdims=True)
    per_example = (pos_loss + neg_loss) * mask
    count = jnp.sum(mask, axis=(1, 2))
    valid = (count > 0.0).astype(jnp.float32)
    loss = jnp.sum(per_example, axis=(1, 2)) / jnp.maximum(count, 1.0)
    h = jnp.sqrt(jnp.sum(head * head * mask, axis=(1, 2)))
    t = jnp.sqrt(jnp.sum(tail * tail * mask, axis=(1, 2)))
    n = jnp.sqrt(jnp.sum(neg * neg, axis=(1, 2)))
    reg = (h + t + n) * valid
    return loss, reg


# ----------------------------------------------------------------------------
# KnowledgeEmbedding module (parameters + glue) in JAX.
# ----------------------------------------------------------------------------
class KnowledgeEmbeddingJAX:
    def __init__(self, embed_size, num_neg_samples, l2_lambda,
                 entity_vocab, relations, main_rel, key):
        """
        entity_vocab: dict entity_name -> vocab_size
        relations:    dict rel_name -> (head_entity, tail_entity, raw_distrib)
        main_rel:     name of the user->product interaction relation
        """
        self.embed_size = embed_size
        self.padded_embed_size = ((embed_size + LANE - 1) // LANE) * LANE
        self.num_neg_samples = num_neg_samples
        self.l2_lambda = l2_lambda
        self.relations = relations
        self.main_rel = main_rel
        self.other_relations = [r for r in relations if r != main_rel]
        self.rel_order = [main_rel] + self.other_relations

        initrange = 0.5 / embed_size
        pad = self.padded_embed_size - embed_size

        # Entity embeddings: [vocab_size + 1, E] uniform(-initrange, initrange),
        # zero-padded on the lane axis to Ep (padding contributes 0 everywhere).
        self.entity_embed = {}
        for name, vs in entity_vocab.items():
            key, sub = jax.random.split(key)
            w = jax.random.uniform(sub, (vs + 1, embed_size),
                                   minval=-initrange, maxval=initrange,
                                   dtype=jnp.float32)
            self.entity_embed[name] = jnp.pad(w, ((0, 0), (0, pad)))

        # Relation vectors [1, Ep], biases [len(distrib)+1, 1] (zeros, as in the
        # torch __init__), and 0.75-power-normalized tail distributions.
        self.rel_vec, self.rel_bias, self.rel_distrib = {}, {}, {}
        for rname, (_h, _t, raw) in relations.items():
            key, sub = jax.random.split(key)
            v = jax.random.uniform(sub, (1, embed_size),
                                   minval=-initrange, maxval=initrange,
                                   dtype=jnp.float32)
            self.rel_vec[rname] = jnp.pad(v, ((0, 0), (0, pad)))
            d = np.power(np.asarray(raw, dtype=np.float64), 0.75)
            d = d / d.sum()
            self.rel_distrib[rname] = jnp.asarray(d, dtype=jnp.float32)
            self.rel_bias[rname] = jnp.zeros((len(raw) + 1, 1), dtype=jnp.float32)

    def _gather_relation(self, rname, head_idxs, tail_idxs, key):
        # torch boolean-masks rows with tail_idx < 0; here (static shapes) we
        # clamp those gathers to row 0 and mask their contributions in-kernel.
        head_name, tail_name, _ = self.relations[rname]
        mask_b = tail_idxs >= 0
        mask = mask_b.astype(jnp.float32)[:, None]
        h_idx = jnp.where(mask_b, head_idxs, 0)
        t_idx = jnp.where(mask_b, tail_idxs, 0)

        # TODO(synk): move these row gathers in-kernel via scalar-prefetched
        # indices + manual DMA from pl.ANY-resident tables to avoid the extra
        # HBM round trip at production B/S/E; at toy sizes it is not the
        # bottleneck.
        head_vec = self.entity_embed[head_name][h_idx]           # (B, Ep)
        tail_vec = self.entity_embed[tail_name][t_idx]           # (B, Ep)
        rel_bias = self.rel_bias[rname][t_idx]                   # (B, 1)

        distrib = self.rel_distrib[rname]
        neg_idx = jax.random.choice(key, distrib.shape[0],
                                    shape=(self.num_neg_samples,),
                                    replace=True, p=distrib)     # multinomial
        neg_vec = self.entity_embed[tail_name][neg_idx]          # (S, Ep)
        return head_vec, tail_vec, self.rel_vec[rname], rel_bias, neg_vec, mask

    def forward(self, batch_idxs, key, impl="pallas"):
        user_idxs = batch_idxs[:, 0]
        product_idxs = batch_idxs[:, 1]
        keys = jax.random.split(key, len(self.rel_order))

        heads, tails, relvecs, biases, negs, masks = [], [], [], [], [], []
        for i, rname in enumerate(self.rel_order):
            if rname == self.main_rel:
                h_idx, t_idx = user_idxs, product_idxs
            else:
                col = 2 + self.other_relations.index(rname)
                h_idx, t_idx = product_idxs, batch_idxs[:, col]
            hv, tv, rv, rb, nv, m = self._gather_relation(rname, h_idx, t_idx,
                                                          keys[i])
            heads.append(hv); tails.append(tv); relvecs.append(rv)
            biases.append(rb); negs.append(nv); masks.append(m)

        head = jnp.stack(heads)       # (R, B, Ep)
        tail = jnp.stack(tails)       # (R, B, Ep)
        relvec = jnp.stack(relvecs)   # (R, 1, Ep)
        bias = jnp.stack(biases)      # (R, B, 1)
        neg = jnp.stack(negs)         # (R, S, Ep)
        mask = jnp.stack(masks)       # (R, B, 1)

        fn = fused_kg_neg_loss_pallas if impl == "pallas" else fused_kg_neg_loss_ref
        loss_per_rel, reg_per_rel = fn(head, tail, relvec, bias, neg, mask)

        total_loss = jnp.sum(loss_per_rel)
        if self.l2_lambda > 0:
            total_loss = total_loss + self.l2_lambda * jnp.sum(reg_per_rel)
        return total_loss


# ----------------------------------------------------------------------------
# Example run
# ----------------------------------------------------------------------------
if __name__ == "__main__":
    key = jax.random.PRNGKey(0)

    embed_size = 32
    num_neg_samples = 8
    batch_size = 8
    l2_lambda = 1e-3

    entity_vocab = {"user": 20, "product": 24, "brand": 12}
    # raw (unnormalized) tail-entity count distributions
    rng = np.random.RandomState(0)
    relations = {
        "purchase":    ("user", "product",
                        rng.randint(1, 10, size=24).astype(np.float64)),
        "produced_by": ("product", "brand",
                        rng.randint(1, 10, size=12).astype(np.float64)),
    }

    key, init_key, idx_key, fwd_key = jax.random.split(key, 4)
    model = KnowledgeEmbeddingJAX(embed_size, num_neg_samples, l2_lambda,
                                  entity_vocab, relations,
                                  main_rel="purchase", key=init_key)

    # batch_idxs[:, 0] = user, [:, 1] = product, [:, 2] = brand (knowledge rel)
    ku, kp, kb = jax.random.split(idx_key, 3)
    batch_idxs = jnp.stack([
        jax.random.randint(ku, (batch_size,), 0, entity_vocab["user"]),
        jax.random.randint(kp, (batch_size,), 0, entity_vocab["product"]),
        jax.random.randint(kb, (batch_size,), 0, entity_vocab["brand"]),
    ], axis=1).astype(jnp.int32)

    loss_pallas = jax.block_until_ready(
        model.forward(batch_idxs, fwd_key, impl="pallas"))
    loss_ref = jax.block_until_ready(
        model.forward(batch_idxs, fwd_key, impl="ref"))

    assert np.isfinite(float(loss_pallas))
    np.testing.assert_allclose(np.asarray(loss_pallas), np.asarray(loss_ref),
                               rtol=1e-5, atol=1e-5)
    print("KERNEL_OK")
</pallas_src>

<mosaic_0001>
module attributes {stable_mosaic.version = 11 : i64} {
  func.func @_fused_kg_neg_loss_kernel(%arg0: i32, %arg1: memref<1x8x128xf32, #tpu.memory_space<vmem>>, %arg2: memref<1x8x128xf32, #tpu.memory_space<vmem>>, %arg3: memref<1x1x128xf32, #tpu.memory_space<vmem>>, %arg4: memref<1x8x1xf32, #tpu.memory_space<vmem>>, %arg5: memref<1x8x128xf32, #tpu.memory_space<vmem>>, %arg6: memref<1x8x1xf32, #tpu.memory_space<vmem>>, %arg7: memref<1x8x128xf32, #tpu.memory_space<vmem>>) attributes {dimension_semantics = [#tpu.dimension_semantics<parallel>], iteration_bounds = array<i64: 2>, scalar_prefetch = 0 : i64, scratch_operands = 0 : i64, tpu.core_type = #tpu.core_type<tc>, window_params = [{transform_indices = @transform_0, window_bounds = array<i64: 1, 8, 128>}, {transform_indices = @transform_1, window_bounds = array<i64: 1, 8, 128>}, {transform_indices = @transform_2, window_bounds = array<i64: 1, 1, 128>}, {transform_indices = @transform_3, window_bounds = array<i64: 1, 8, 1>}, {transform_indices = @transform_4, window_bounds = array<i64: 1, 8, 128>}, {transform_indices = @transform_5, window_bounds = array<i64: 1, 8, 1>}, {transform_indices = @transform_6, window_bounds = array<i64: 1, 8, 128>}]} {
    %c0 = arith.constant 0 : index
    %c0_0 = arith.constant 0 : index
    %c0_1 = arith.constant 0 : index
    %0 = vector.load %arg1[%c0, %c0_0, %c0_1] : memref<1x8x128xf32, #tpu.memory_space<vmem>>, vector<1x8x128xf32>
    %1 = vector.shape_cast %0 : vector<1x8x128xf32> to vector<8x128xf32>
    %c0_2 = arith.constant 0 : index
    %c0_3 = arith.constant 0 : index
    %c0_4 = arith.constant 0 : index
    %2 = vector.load %arg2[%c0_2, %c0_3, %c0_4] : memref<1x8x128xf32, #tpu.memory_space<vmem>>, vector<1x8x128xf32>
    %3 = vector.shape_cast %2 : vector<1x8x128xf32> to vector<8x128xf32>
    %c0_5 = arith.constant 0 : index
    %c0_6 = arith.constant 0 : index
    %c0_7 = arith.constant 0 : index
    %4 = vector.load %arg3[%c0_5, %c0_6, %c0_7] : memref<1x1x128xf32, #tpu.memory_space<vmem>>, vector<1x1x128xf32>
    %5 = vector.shape_cast %4 : vector<1x1x128xf32> to vector<1x128xf32>
    %c0_8 = arith.constant 0 : index
    %c0_9 = arith.constant 0 : index
    %c0_10 = arith.constant 0 : index
    %6 = vector.load %arg4[%c0_8, %c0_9, %c0_10] : memref<1x8x1xf32, #tpu.memory_space<vmem>>, vector<1x8x1xf32>
    %7 = vector.shape_cast %6 : vector<1x8x1xf32> to vector<8x1xf32>
    %c0_11 = arith.constant 0 : index
    %c0_12 = arith.constant 0 : index
    %c0_13 = arith.constant 0 : index
    %8 = vector.load %arg5[%c0_11, %c0_12, %c0_13] : memref<1x8x128xf32, #tpu.memory_space<vmem>>, vector<1x8x128xf32>
    %9 = vector.shape_cast %8 : vector<1x8x128xf32> to vector<8x128xf32>
    %c0_14 = arith.constant 0 : index
    %c0_15 = arith.constant 0 : index
    %c0_16 = arith.constant 0 : index
    %10 = vector.load %arg6[%c0_14, %c0_15, %c0_16] : memref<1x8x1xf32, #tpu.memory_space<vmem>>, vector<1x8x1xf32>
    %11 = vector.shape_cast %10 : vector<1x8x1xf32> to vector<8x1xf32>
    %12 = vector.broadcast %5 : vector<1x128xf32> to vector<8x128xf32>
    %13 = arith.addf %1, %12 : vector<8x128xf32>
    %14 = arith.mulf %13, %3 : vector<8x128xf32>
    %cst = arith.constant dense<0.000000e+00> : vector<8xf32>
    %15 = vector.multi_reduction <add>, %14, %cst [1] : vector<8x128xf32> to vector<8xf32>
    %16 = vector.shape_cast %15 : vector<8xf32> to vector<8x1xf32>
    %17 = arith.addf %16, %7 : vector<8x1xf32>
    %cst_17 = arith.constant 0.000000e+00 : f32
    %18 = vector.broadcast %cst_17 : f32 to vector<8x1xf32>
    %19 = arith.subf %18, %17 : vector<8x1xf32>
    %cst_18 = arith.constant 0.000000e+00 : f32
    %20 = vector.broadcast %cst_18 : f32 to vector<8x1xf32>
    %21 = arith.maximumf %19, %20 : vector<8x1xf32>
    %22 = math.absf %19 : vector<8x1xf32>
    %cst_19 = arith.constant 0.000000e+00 : f32
    %23 = vector.broadcast %cst_19 : f32 to vector<8x1xf32>
    %24 = arith.subf %23, %22 : vector<8x1xf32>
    %25 = math.exp %24 : vector<8x1xf32>
    %cst_20 = arith.constant 1.000000e+00 : f32
    %26 = vector.broadcast %cst_20 : f32 to vector<8x1xf32>
    %27 = arith.addf %26, %25 : vector<8x1xf32>
    %28 = math.log %27 : vector<8x1xf32>
    %29 = arith.addf %21, %28 : vector<8x1xf32>
    %cst_21 = arith.constant dense<0.000000e+00> : vector<8x8xf32>
    %30 = tpu.matmul %13, %9, %cst_21 {dimension_numbers = #tpu.dot_dimension_numbers<[1], [1], [0], [0], [0, 0, 1, 0], [], []>} : vector<8x128xf32>, vector<8x128xf32>, vector<8x8xf32> -> vector<8x8xf32>
    %31 = vector.broadcast %7 : vector<8x1xf32> to vector<8x8xf32>
    %32 = arith.addf %30, %31 : vector<8x8xf32>
    %cst_22 = arith.constant 0.000000e+00 : f32
    %33 = vector.broadcast %cst_22 : f32 to vector<8x8xf32>
    %34 = arith.maximumf %32, %33 : vector<8x8xf32>
    %35 = math.absf %32 : vector<8x8xf32>
    %cst_23 = arith.constant 0.000000e+00 : f32
    %36 = vector.broadcast %cst_23 : f32 to vector<8x8xf32>
    %37 = arith.subf %36, %35 : vector<8x8xf32>
    %38 = math.exp %37 : vector<8x8xf32>
    %cst_24 = arith.constant 1.000000e+00 : f32
    %39 = vector.broadcast %cst_24 : f32 to vector<8x8xf32>
    %40 = arith.addf %39, %38 : vector<8x8xf32>
    %41 = math.log %40 : vector<8x8xf32>
    %42 = arith.addf %34, %41 : vector<8x8xf32>
    %cst_25 = arith.constant dense<0.000000e+00> : vector<8xf32>
    %43 = vector.multi_reduction <add>, %42, %cst_25 [1] : vector<8x8xf32> to vector<8xf32>
    %44 = vector.shape_cast %43 : vector<8xf32> to vector<8x1xf32>
    %45 = arith.addf %29, %44 : vector<8x1xf32>
    %46 = arith.mulf %45, %11 : vector<8x1xf32>
    %47 = vector.shape_cast %11 : vector<8x1xf32> to vector<1x8x1xf32>
    %cst_26 = arith.constant dense<0.000000e+00> : vector<1xf32>
    %48 = vector.multi_reduction <add>, %47, %cst_26 [1, 2] : vector<1x8x1xf32> to vector<1xf32>
    %49 = vector.shape_cast %48 : vector<1xf32> to vector<1x1x1xf32>
    %50 = vector.extract %49[0, 0, 0] : f32 from vector<1x1x1xf32>
    %51 = vector.broadcast %50 : f32 to vector<1x1xf32>
    %cst_27 = arith.constant 0.000000e+00 : f32
    %52 = vector.broadcast %cst_27 : f32 to vector<1x1xf32>
    %53 = arith.cmpf ogt, %51, %52 : vector<1x1xf32>
    %54 = arith.extui %53 : vector<1x1xi1> to vector<1x1xi32>
    %55 = arith.sitofp %54 : vector<1x1xi32> to vector<1x1xf32>
    %56 = vector.shape_cast %46 : vector<8x1xf32> to vector<1x8x1xf32>
    %cst_28 = arith.constant dense<0.000000e+00> : vector<1xf32>
    %57 = vector.multi_reduction <add>, %56, %cst_28 [1, 2] : vector<1x8x1xf32> to vector<1xf32>
    %58 = vector.shape_cast %57 : vector<1xf32> to vector<1x1x1xf32>
    %59 = vector.extract %58[0, 0, 0] : f32 from vector<1x1x1xf32>
    %60 = vector.broadcast %59 : f32 to vector<1x1xf32>
    %cst_29 = arith.constant 1.000000e+00 : f32
    %61 = vector.broadcast %cst_29 : f32 to vector<1x1xf32>
    %62 = arith.maximumf %51, %61 : vector<1x1xf32>
    %63 = arith.divf %60, %62 : vector<1x1xf32>
    %64 = arith.mulf %1, %1 : vector<8x128xf32>
    %65 = vector.broadcast %11 : vector<8x1xf32> to vector<8x128xf32>
    %66 = arith.mulf %64, %65 : vector<8x128xf32>
    %67 = vector.shape_cast %66 : vector<8x128xf32> to vector<1x8x128xf32>
    %cst_30 = arith.constant dense<0.000000e+00> : vector<1xf32>
    %68 = vector.multi_reduction <add>, %67, %cst_30 [1, 2] : vector<1x8x128xf32> to vector<1xf32>
    %69 = vector.shape_cast %68 : vector<1xf32> to vector<1x1x1xf32>
    %70 = vector.extract %69[0, 0, 0] : f32 from vector<1x1x1xf32>
    %71 = vector.broadcast %70 : f32 to vector<1x1xf32>
    %72 = arith.mulf %3, %3 : vector<8x128xf32>
    %73 = vector.broadcast %11 : vector<8x1xf32> to vector<8x128xf32>
    %74 = arith.mulf %72, %73 : vector<8x128xf32>
    %75 = vector.shape_cast %74 : vector<8x128xf32> to vector<1x8x128xf32>
    %cst_31 = arith.constant dense<0.000000e+00> : vector<1xf32>
    %76 = vector.multi_reduction <add>, %75, %cst_31 [1, 2] : vector<1x8x128xf32> to vector<1xf32>
    %77 = vector.shape_cast %76 : vector<1xf32> to vector<1x1x1xf32>
    %78 = vector.extract %77[0, 0, 0] : f32 from vector<1x1x1xf32>
    %79 = vector.broadcast %78 : f32 to vector<1x1xf32>
    %80 = arith.mulf %9, %9 : vector<8x128xf32>
    %81 = vector.shape_cast %80 : vector<8x128xf32> to vector<1x8x128xf32>
    %cst_32 = arith.constant dense<0.000000e+00> : vector<1xf32>
    %82 = vector.multi_reduction <add>, %81, %cst_32 [1, 2] : vector<1x8x128xf32> to vector<1xf32>
    %83 = vector.shape_cast %82 : vector<1xf32> to vector<1x1x1xf32>
    %84 = vector.extract %83[0, 0, 0] : f32 from vector<1x1x1xf32>
    %85 = vector.broadcast %84 : f32 to vector<1x1xf32>
    %86 = math.sqrt %71 : vector<1x1xf32>
    %87 = math.sqrt %79 : vector<1x1xf32>
    %88 = arith.addf %86, %87 : vector<1x1xf32>
    %89 = math.sqrt %85 : vector<1x1xf32>
    %90 = arith.addf %88, %89 : vector<1x1xf32>
    %91 = arith.mulf %90, %55 : vector<1x1xf32>
    %92 = tpu.iota {dimensions = array<i32: 0>} : vector<8x128xi32>
    %c4_i32 = arith.constant 4 : i32
    %93 = vector.broadcast %c4_i32 : i32 to vector<8x128xi32>
    %94 = arith.cmpi slt, %92, %93 : vector<8x128xi32>
    %95 = arith.extui %94 : vector<8x128xi1> to vector<8x128xi32>
    %96 = arith.sitofp %95 : vector<8x128xi32> to vector<8x128xf32>
    %97 = vector.broadcast %63 : vector<1x1xf32> to vector<8x128xf32>
    %98 = arith.mulf %96, %97 : vector<8x128xf32>
    %cst_33 = arith.constant 1.000000e+00 : f32
    %99 = vector.broadcast %cst_33 : f32 to vector<8x128xf32>
    %100 = arith.subf %99, %96 : vector<8x128xf32>
    %101 = vector.broadcast %91 : vector<1x1xf32> to vector<8x128xf32>
    %102 = arith.mulf %100, %101 : vector<8x128xf32>
    %103 = arith.addf %98, %102 : vector<8x128xf32>
    %c0_34 = arith.constant 0 : index
    %c0_35 = arith.constant 0 : index
    %c0_36 = arith.constant 0 : index
    %104 = vector.load %arg7[%c0_34, %c0_35, %c0_36] : memref<1x8x128xf32, #tpu.memory_space<vmem>>, vector<1x8x128xf32>
    %105 = vector.shape_cast %104 : vector<1x8x128xf32> to vector<8x128xf32>
    %106 = vector.shape_cast %103 : vector<8x128xf32> to vector<1x8x128xf32>
    tpu.vector_store %arg7[%c0_34, %c0_35, %c0_36], %106 {strides = array<i32>} : memref<1x8x128xf32, #tpu.memory_space<vmem>>, vector<1x8x128xf32>,
    return
  }
  func.func @transform_0(%arg0: i32) -> (i32, i32, i32) {
    %c0_i32 = arith.constant 0 : i32
    %c0_i32_0 = arith.constant 0 : i32
    %c0_i32_1 = arith.constant 0 : i32
    return %arg0, %c0_i32, %c0_i32_0 : i32, i32, i32
  }
  func.func @transform_1(%arg0: i32) -> (i32, i32, i32) {
    %c0_i32 = arith.constant 0 : i32
    %c0_i32_0 = arith.constant 0 : i32
    %c0_i32_1 = arith.constant 0 : i32
    return %arg0, %c0_i32, %c0_i32_0 : i32, i32, i32
  }
  func.func @transform_2(%arg0: i32) -> (i32, i32, i32) {
    %c0_i32 = arith.constant 0 : i32
    %c0_i32_0 = arith.constant 0 : i32
    %c0_i32_1 = arith.constant 0 : i32
    return %arg0, %c0_i32, %c0_i32_0 : i32, i32, i32
  }
  func.func @transform_3(%arg0: i32) -> (i32, i32, i32) {
    %c0_i32 = arith.constant 0 : i32
    %c0_i32_0 = arith.constant 0 : i32
    %c0_i32_1 = arith.constant 0 : i32
    return %arg0, %c0_i32, %c0_i32_0 : i32, i32, i32
  }
  func.func @transform_4(%arg0: i32) -> (i32, i32, i32) {
    %c0_i32 = arith.constant 0 : i32
    %c0_i32_0 = arith.constant 0 : i32
    %c0_i32_1 = arith.constant 0 : i32
    return %arg0, %c0_i32, %c0_i32_0 : i32, i32, i32
  }
  func.func @transform_5(%arg0: i32) -> (i32, i32, i32) {
    %c0_i32 = arith.constant 0 : i32
    %c0_i32_0 = arith.constant 0 : i32
    %c0_i32_1 = arith.constant 0 : i32
    return %arg0, %c0_i32, %c0_i32_0 : i32, i32, i32
  }
  func.func @transform_6(%arg0: i32) -> (i32, i32, i32) {
    %c0_i32 = arith.constant 0 : i32
    %c0_i32_0 = arith.constant 0 : i32
    %c0_i32_1 = arith.constant 0 : i32
    return %arg0, %c0_i32, %c0_i32_0 : i32, i32, i32
  }
}

</mosaic_0001>

<bundles_post_ra>
// kernel: tpu_custom_call.1
= control target key start
LH: loop header
LB: loop body
LE: loop exit
PB: predicated region body
PF: predicated region fallthrough
CT: control target
= control target key end

     0   :  { %11 = vsyncpa [#allocation3], 0  ;;  %s1127_s0 = inlined_call_operand.vmem [shape: f32[2,8,128], index: 0, kind: input, shape index: {}]   ;;  %s1128_s1 = inlined_call_operand.vmem [shape: f32[2,8,128], index: 1, kind: input, shape index: {}]   ;;  %s1129_s2 = inlined_call_operand.vmem [shape: f32[2,1,128], index: 2, kind: input, shape index: {}]   ;;  %s1130_s3 = inlined_call_operand.vmem [shape: f32[2,8,1], index: 3, kind: input, shape index: {}]   ;;  %s1131_s4 = inlined_call_operand.hbm [shape: f32[2,8,128], index: 4, kind: input, shape index: {}]   ;;  %s1132_s5 = inlined_call_operand.vmem [shape: f32[2,8,1], index: 5, kind: input, shape index: {}]   ;;  %s1133_s6 = inlined_call_operand.hbm [shape: f32[2,8,128], index: 6, kind: output, shape index: {}]  }
   0x1   :  { %13 = vsyncpa [#allocation3 + $0x1], 0 }
   0x2   :  { %14 = vsyncpa [#allocation4], 0 }
   0x3   :  { %16 = vsyncpa [#allocation4 + $0x1], 0  ;;  %s947_s21 = smov 0   ;;  %s949_s22 = smov 0  }
   0x4   :  { %s951_s23 = smov 0   ;;  %s953_s24 = smov 0  }
   0x5 LB: > { %s968_s25 = sadd.s32 4294967295, %s905_s24   ;;  %s710_s26 = sadd.s32 4294967294, %s905_s24   ;;  %s905_s24 = sphi %s953_s24, %s1150_s24   ;;  %s901_s23 = sphi %s951_s23, %s1149_s23   ;;  %s897_s22 = sphi %s949_s22, %s1148_s22   ;;  %s893_s21 = sphi %s947_s21, %s1147_s21  }
   0x6   : > { %s972_s27 = sadd.s32 1, %s905_s24   ;;  %s133_s28 = sadd.s32 1, %s901_s23 }
   0x7   : > { %s130_s29 = ssub.s32 %s905_s24, %s972_s27  ;;  %p140_p0 = scmp.ne.s32.totalorder %s901_s23, %s897_s22 }
   0x8   : > { %p131_p1 = scmp.eq.s32.totalorder %s130_s29, 0  ;;  %p141_p2 = scmp.eq.s32.totalorder %s905_s24, 0 }
   0x9   : > { %p146_p3 = scmp.ne.s32.totalorder %s897_s22, %s893_s21  ;;  %p147_p4 = scmp.eq.s32.totalorder %s968_s25, 0 }
   0xa   : > { %s984_s30 = scalar_select %p131_p1, %s901_s23, %s133_s28  }
   0xb   : > { %p986_p5 = por %p141_p2, %p140_p0  ;;  %p990_p6 = por %p147_p4, %p146_p3 }
   0xc   : > { %p196_p7 = scmp.eq.s32.totalorder %s968_s25, 1  ;;  %p202_p8 = scmp.eq.s32.totalorder %s710_s26, 1 }
   0xd   : > { %s1137_s8 = scalar_select %p990_p6, 1, 0 }
   0xe   : > { %p758_p10 = scmp.lt.s32.totalorder %s905_s24, 2  ;;  %p997_p11 = por %p196_p7, %p140_p0 }
   0xf   : > { %p1001_p12 = por %p202_p8, %p146_p3  ;;  %s249_s11 = sand.u32 1, %s901_s23  }
  0x10   : > { %s1138_s9 = scalar_select %p997_p11, 1, 0 }
  0x11   : > { %s1139_s10 = scalar_select %p1001_p12, 1, 0 }
  0x12   : > { %s714_s12 = sshll.u32 %s905_s24, 7  ;;  %s713_s13 = sshll.u32 %s249_s11, 3 }
  0x13   : > { %s1010_s16 = scalar_lea.hbm %s1131_s4, %s714_s12  ;;  %s253_s17 = scalar_lea.vmem [#allocation2], %s713_s13 }
  0x14   : > { %s260_s18 = sshll.u32 %s253_s17, 4  ;;  %p1014_p13 = pnand %p758_p10, %p986_p5  ;;  %s1018_s18 = int_to_ptr.vmem [resolvable:$true] %s260_s18 }
  0x15   : > { %s250_s20 = scalar_lea.sflag [#allocation3], %s249_s11  ;;  %s813_s26 = scalar_lea.hbm %s1010_s16, 128 }
  0x16   : > { %p814_p2 = scmp.ne.s32.totalorder %s1010_s16, %s813_s26  ;;  %p815_p3 = pneg %p1014_p13 }
  0x17   : > { %s818_s7 = scalar_lea.hbm %s1131_s4, 256  ;;  %p819_p5 = scmp.lt.s32.totalorder %s1010_s16, %s1131_s4 }
  0x18   : > { %p816_p4 = pnand %p815_p3, %p814_p2  ;;  %p820_p8 = scmp.lt.s32.totalorder %s818_s7, %s813_s26 }
  0x1a   : > { %p817_p7 = pneg %p816_p4  ;;  %p821_p10 = por %p820_p8, %p819_p5 }
  0x1c   : > { %p822_p9 = pnand %p821_p10, %p817_p7 }
  0x1e   : > { %825 = shalt.err (!%p822_p9)
}
  0x1f   : > { %s826_s11 = scalar_lea.vmem %s1018_s18, 128  ;;  %s907_s14 = smov [#allocation2]  }
  0x20   : > { %p827_p0 = scmp.ne.s32.totalorder %s1018_s18, %s826_s11  ;;  %s831_s15 = sshll.u32 %s907_s14, 4  ;;  %s832_s15 = int_to_ptr.vmem [resolvable:$false] %s831_s15 }
  0x21   : > { %s833_s17 = scalar_lea.vmem %s832_s15, 256  ;;  %p834_p4 = scmp.lt.s32.totalorder %s1018_s18, %s832_s15 }
  0x22   : > { %p829_p1 = pnand %p827_p0, %p815_p3  ;;  %p835_p12 = scmp.lt.s32.totalorder %s833_s17, %s826_s11 }
  0x24   : > { %p830_p2 = pneg %p829_p1  ;;  %p836_p11 = por %p835_p12, %p834_p4 }
  0x26   : > { %p837_p6 = pnand %p836_p11, %p830_p2 }
  0x28   : > { %840 = shalt.err (!%p837_p6)
}
  0x29   : > { %753 = dma.hbm_to_vmem [thread:$0]  (!%p1014_p13), %s1010_s16, 128, %s1018_s18, %s250_s20  }
  0x2a   : > { %p1141_p9 = scmp.lt.s32.totalorder %s905_s24, 3  ;;  %p1142_p7 = scmp.ge.s32.totalorder %s905_s24, 1 }
  0x2c   : > { %p273_p0 = pnand %p1142_p7, %p1141_p9 }
  0x2d   : > { %s1045_s26 = sand.u32 (!%p273_p0), 1, %s897_s22   ;;  %p1143_p6 = scmp.ne.s32.totalorder (!%p273_p0), %s1137_s8, 0 }
  0x2e   : > { %276 = sbr.rel (%p273_p0) target bundleno = 693 (0x2b5), region = 44  ;;  %s716_s28 = sshll.u32 (!%p273_p0), %s1045_s26, 3 }
  0x2f   : > { %s279_s29 = scalar_lea.sflag (!%p273_p0), [#allocation3], %s1045_s26  ;;  %s282_s19 = scalar_lea.vmem (!%p273_p0), [#allocation2], %s716_s28 }
  0x33   : > { %884 = dma.done.wait (%p1143_p6), %s279_s29, 128  }
  0x34   : > { %886 = vsyncadd (%p1143_p6), %s279_s29, 4294967168  ;;  %p330_p11 = scmp.lt.s32.totalorder %s968_s25, 1  ;;  %v908_v0 = vmov 0.0   ;;  %vm909_vm0 = vmmov 0   ;;  %v910_v1 = vmov 0   ;;  %v353_v2 = vld [vmem:[%s282_s19] sm:$0xff] }
  0x35   : > { %731 = vmatprep.subr.mxu0 %v908_v0  ;;  %733 = vmatprep.mubr.msk.f32.mxu0 %vm909_vm0, %v908_v0  ;;  %vm460_vm1 = vcmask 64512   ;;  %vm466_vm2 = vcmask 7168   ;;  %v524_v46 = vmul.f32 %v353_v2, %v353_v2  ;;  %s726_s15 = sshll.u32 %s968_s25, 7  ;;  %s570_s7 = scalar_lea.sflag [#allocation4], %s1045_s26 }
  0x36   : > { %s331_s16 = scalar_select %p330_p11, %s968_s25, 1  ;;  %795 = vset.pattern.permute.xlu0 %v910_v1  ;;  %796 = vset.pattern.permute.xlu1 %v910_v1 }
  0x37   : > { %732 = vmatpush3.xpose.msra.mxu0 %v353_v2  ;;  %s581_s19 = scalar_lea.hbm %s1133_s6, %s726_s15  ;;  %p1144_p13 = scmp.ne.s32.totalorder %s1138_s9, 0 }
  0x38   : > { %s1059_s18 = sshll.u32 %s331_s16, 3  ;;  %s340_s8 = scalar_lea.vmem %s1129_s2, %s331_s16 }
  0x39   : > { %s333_s11 = scalar_lea.vmem %s1127_s0, %s1059_s18  ;;  %s344_s17 = scalar_lea.vmem %s1130_s3, %s1059_s18  ;;  %v722_v4 = vld [vmem:[%s340_s8] ss:$0 sm:$0xff] }
  0x3a   : > { %v349_v3 = vld [vmem:[%s333_s11] sm:$0xff]  ;;  %s337_s16 = scalar_lea.vmem %s1128_s1, %s1059_s18  ;;  %s348_s8 = scalar_lea.vmem %s1132_s5, %s1059_s18 }
  0x3b   : > { %v361_v5 = vadd.f32 %v722_v4, %v349_v3  ;;  %v352_v6 = vld [vmem:[%s344_s17] sm:$0xff]  ;;  %v495_v37 = vmul.f32 %v349_v3, %v349_v3  ;;  %s329_s17 = scalar_lea.vmem [#allocation5], %s716_s28 }
  0x3c   : > { %378 = vperm.xlu0 %795, %v352_v6   ;;  %v350_v7 = vld [vmem:[%s337_s16] sm:$0xff]  ;;  %s583_s29 = sshll.u32 %s329_s17, 4  ;;  %s584_s29 = int_to_ptr.vmem [resolvable:$true] %s583_s29 }
  0x3d   : > { %734 = vmatmul.mubr.f32.vlgmr.msra.gmra.mxu0 %v361_v5  ;;  %v362_v8 = vmul.f32 %v361_v5, %v350_v7  ;;  %v354_v23 = vld [vmem:[%s348_s8] sm:$0xff]  ;;  %v512_v41 = vmul.f32 %v350_v7, %v350_v7  ;;  %s841_s8 = scalar_lea.vmem %s584_s29, 128 }
  0x3e   : > { %v467_v24 = vsel %vm466_vm2, %v354_v23, 0.0  ;;  %p842_p12 = scmp.ne.s32.totalorder %s584_s29, %s841_s8 }
  0x40   : > { %p843_p1 = pnand %p842_p12, %p1144_p13 }
  0x42   : > { %p844_p3 = pneg %p843_p1 }
  0x5b   : > { %363 = vadd.xlane.f32.xlu0 %v362_v8 }
  0xb7   : > { %v379_v9 = vpop.permute.xlu0 %378 }
  0xe4   : > { %v364_v25 = vpop.xlane.xlu0 %363 }
  0xe5   : > { %v365_v26 = vadd.f32 %v364_v25, %v352_v6 }
  0xe7   : > { %v366_v27 = vsub.f32 0.0, %v365_v26 }
  0xe9   : > { %v368_v28 = vand.u32 2147483647, %v366_v27  ;;  %v367_v34 = vmax.f32 %v366_v27, 0.0 }
  0xeb   : > { %v369_v29 = vsub.f32 0.0, %v368_v28 }
  0xed   : > { %v370_v30 = vmul.f32 1.442695, %v369_v29 }
  0xfd   : > { %v447_v10 = vpop.f32.mrf.mxu0 }
  0xfe   : > { %v448_v11 = vadd.f32 %v447_v10, %v379_v9 }
  0xff   : > { %v735_v12 = vpop.f32.mrf.mxu0 }
 0x100   : > { %v452_v13 = vand.u32 2147483647, %v448_v11  ;;  %v451_v19 = vmax.f32 %v448_v11, 0.0 }
 0x102   : > { %v453_v14 = vsub.f32 0.0, %v452_v13 }
 0x104   : > { %v454_v15 = vmul.f32 1.442695, %v453_v14 }
 0x106   : > { %797 = vpow2.f32 %v454_v15 }
 0x113   : > { %v798_v16 = vpop.eup %797 }
 0x114   : > { %v456_v17 = vadd.f32 1.0, %v798_v16 }
 0x116   : > { %799 = vlog2.f32 %v456_v17 }
 0x117   : > { %801 = vpow2.f32 %v370_v30 }
 0x123   : > { %v800_v18 = vpop.eup %799 }
 0x124   : > { %v458_v20 = vmul.f32 0.6931472, %v800_v18  ;;  %v802_v31 = vpop.eup %801 }
 0x125   : > { %v372_v32 = vadd.f32 1.0, %v802_v31 }
 0x126   : > { %v459_v21 = vadd.f32 %v458_v20, %v451_v19 }
 0x127   : > { %803 = vlog2.f32 %v372_v32 }
 0x128   : > { %v461_v22 = vsel %vm460_vm1, %v459_v21, 0.0 }
 0x129   : > { %462 = vadd.xlane.f32.xlu1 %v461_v22 }
 0x134   : > { %v804_v33 = vpop.eup %803 }
 0x135   : > { %v374_v36 = vmul.f32 0.6931472, %v804_v33 }
 0x137   : > { %v375_v38 = vadd.f32 %v374_v36, %v367_v34 }
 0x13a   : > { %498 = vperm.xlu1 %796, %v354_v23  }
 0x15e   : > { %468 = vadd.xlane.f32.xlu1 %v467_v24  ;;  %v559_v24 = vlaneseq }
 0x160   : > { %v560_v26 = vshrl.u32 %v559_v24, 7 }
 0x162   : > { %vm561_vm6 = vcmp.lt.s32.totalorder %v560_v26, 4 }
 0x1b2   : > { %v463_v35 = vpop.xlane.xlu1 %462 }
 0x1b3   : > { %v464_v42 = vadd.f32 %v463_v35, %v375_v38 }
 0x1b5   : > { %v465_v44 = vmul.f32 %v464_v42, %v354_v23 }
 0x1b6   : > { %v499_v39 = vpop.permute.xlu1 %498 }
 0x1b7   : > { %v501_v40 = vmul.f32 %v499_v39, %v495_v37  ;;  %v513_v43 = vmul.f32 %v512_v41, %v499_v39  ;;  %v481_v45 = vsel %vm466_vm2, %v465_v44, 0.0 }
 0x1b9   : > { %502 = vadd.xlane.f32.xlu0 %v501_v40 }
 0x1bd   : > { %514 = vadd.xlane.f32.xlu0 %v513_v43  ;;  %v724_v43 = vsel %vm561_vm6, 1.0, %v908_v0 }
 0x1c1   : > { %482 = vadd.xlane.f32.xlu0 %v481_v45 }
 0x1c5   : > { %525 = vadd.xlane.f32.xlu0 %v524_v46  ;;  %v565_v46 = vsub.f32 1.0, %v724_v43 }
 0x1e7   : > { %v469_v47 = vpop.xlane.xlu1 %468 }
 0x1e8   : > { %v470_v48 = vrot.slane %v469_v47, 4 }
 0x1ea   : > { %v471_v49 = vadd.f32 %v470_v48, %v469_v47 }
 0x1ec   : > { %v472_v50 = vrot.slane %v471_v49, 2 }
 0x1ee   : > { %v473_v51 = vadd.f32 %v472_v50, %v471_v49 }
 0x1f0   : > { %v474_v52 = vrot.slane %v473_v51, 1 }
 0x1f2   : > { %v475_v53 = vadd.f32 %v474_v52, %v473_v51 }
 0x1f4   : > { %736 = vpush %v475_v53 }
 0x225   : > { %s1082_s18 = spop %736 }
 0x226   : > { %v477_v19 = vstv %s1082_s18  ;;  %s911_s18 = smov [#allocation5]  }
 0x227   : > { %v492_v22 = vmax.f32 %v477_v19, 1.0  ;;  %vm478_vm9 = vcmp.gt.f32.partialorder %v477_v19, 0.0  ;;  %s845_s25 = sshll.u32 %s911_s18, 4  ;;  %s846_s25 = int_to_ptr.vmem [resolvable:$false] %s845_s25 }
 0x228   : > { %v723_v48 = vsel %vm478_vm9, 1.0, %v908_v0  ;;  %s847_s28 = scalar_lea.vmem %s846_s25, 256  ;;  %p848_p5 = scmp.lt.s32.totalorder %s584_s29, %s846_s25 }
 0x229   : > { %p849_p8 = scmp.lt.s32.totalorder %s847_s28, %s841_s8 }
 0x22b   : > { %p850_p10 = por %p849_p8, %p848_p5 }
 0x22d   : > { %p851_p2 = pnand %p850_p10, %p844_p3 }
 0x242   : > { %v503_v54 = vpop.xlane.xlu0 %502 }
 0x243   : > { %v504_v55 = vrot.slane %v503_v54, 4 }
 0x245   : > { %v505_v56 = vadd.f32 %v504_v55, %v503_v54 }
 0x246   : > { %v515_v57 = vpop.xlane.xlu0 %514 }
 0x247   : > { %v516_v58 = vrot.slane %v515_v57, 4  ;;  %v506_v60 = vrot.slane %v505_v56, 2 }
 0x249   : > { %v517_v59 = vadd.f32 %v516_v58, %v515_v57  ;;  %v507_v3 = vadd.f32 %v506_v60, %v505_v56 }
 0x24a   : > { %v483_v61 = vpop.xlane.xlu0 %482 }
 0x24b   : > { %v518_v62 = vrot.slane %v517_v59, 2  ;;  %v484_v63 = vrot.slane %v483_v61, 4  ;;  %v508_v9 = vrot.slane %v507_v3, 1 }
 0x24d   : > { %v485_v1 = vadd.f32 %v484_v63, %v483_v61  ;;  %v519_v6 = vadd.f32 %v518_v62, %v517_v59  ;;  %v509_v15 = vadd.f32 %v508_v9, %v507_v3 }
 0x24e   : > { %v526_v2 = vpop.xlane.xlu0 %525 }
 0x24f   : > { %v486_v4 = vrot.slane %v485_v1, 2  ;;  %v527_v5 = vrot.slane %v526_v2, 4  ;;  %v520_v12 = vrot.slane %v519_v6, 1 }
 0x251   : > { %v528_v7 = vadd.f32 %v527_v5, %v526_v2  ;;  %v487_v8 = vadd.f32 %v486_v4, %v485_v1  ;;  %v521_v16 = vadd.f32 %v520_v12, %v519_v6 }
 0x253   : > { %v529_v10 = vrot.slane %v528_v7, 2  ;;  %v488_v11 = vrot.slane %v487_v8, 1 }
 0x255   : > { %v530_v13 = vadd.f32 %v529_v10, %v528_v7  ;;  %v489_v14 = vadd.f32 %v488_v11, %v487_v8 }
 0x257   : > { %738 = vpush %v489_v14  ;;  %v531_v17 = vrot.slane %v530_v13, 1 }
 0x258   : > { %740 = vpush %v509_v15 }
 0x259   : > { %742 = vpush %v521_v16  ;;  %v532_v18 = vadd.f32 %v531_v17, %v530_v13 }
 0x25b   : > { %744 = vpush %v532_v18 }
 0x288   : > { %s1084_s12 = spop %738 }
 0x289   : > { %s741_s13 = spop %740  ;;  %v491_v38 = vstv %s1084_s12 }
 0x28a   : > { %v511_v20 = vstv %s741_s13  ;;  %s743_s11 = spop %742 }
 0x28b   : > { %805 = vrsqrt.f32 %v511_v20  ;;  %v523_v21 = vstv %s743_s11  ;;  %vm537_vm3 = vcmp.eq.f32.partialorder %v511_v20, inf  ;;  %v540_v29 = vand.u32 2147483648, %v511_v20 }
 0x28c   : > { %s745_s14 = spop %744  ;;  %807 = vrsqrt.f32 %v523_v21  ;;  %vm539_vm4 = vcmp.eq.f32.partialorder %v511_v20, 0.0  ;;  %vm544_vm5 = vcmp.eq.f32.partialorder %v523_v21, inf  ;;  %v547_v34 = vand.u32 2147483648, %v523_v21 }
 0x28d   : > { %v534_v23 = vstv %s745_s14  ;;  %vm546_vm7 = vcmp.eq.f32.partialorder %v523_v21, 0.0 }
 0x28e   : > { %809 = vrsqrt.f32 %v534_v23  ;;  %vm552_vm8 = vcmp.eq.f32.partialorder %v534_v23, inf  ;;  %v555_v40 = vand.u32 2147483648, %v534_v23  ;;  %vm554_vm10 = vcmp.eq.f32.partialorder %v534_v23, 0.0 }
 0x28f   : > { %811 = vrcp.f32 %v492_v22 }
 0x298   : > { %v806_v25 = vpop.eup %805 }
 0x299   : > { %v536_v27 = vmul.f32 %v806_v25, %v511_v20  ;;  %v808_v28 = vpop.eup %807 }
 0x29a   : > { %v543_v31 = vmul.f32 %v808_v28, %v523_v21 }
 0x29b   : > { %v538_v30 = vsel %vm537_vm3, %v511_v20, %v536_v27  ;;  %v810_v32 = vpop.eup %809 }
 0x29c   : > { %v541_v33 = vsel %vm539_vm4, %v540_v29, %v538_v30  ;;  %v545_v35 = vsel %vm544_vm5, %v523_v21, %v543_v31  ;;  %v551_v36 = vmul.f32 %v810_v32, %v534_v23  ;;  %v812_v37 = vpop.eup %811 }
 0x29d   : > { %v548_v39 = vsel %vm546_vm7, %v547_v34, %v545_v35  ;;  %v494_v45 = vmul.f32 %v812_v37, %v491_v38 }
 0x29e   : > { %v549_v41 = vadd.f32 %v548_v39, %v541_v33  ;;  %v553_v42 = vsel %vm552_vm8, %v534_v23, %v551_v36 }
 0x29f   : > { %v556_v44 = vsel %vm554_vm10, %v555_v40, %v553_v42  ;;  %v564_v50 = vmul.f32 %v724_v43, %v494_v45 }
 0x2a0   : > { %v557_v47 = vadd.f32 %v556_v44, %v549_v41 }
 0x2a2   : > { %v558_v49 = vmul.f32 %v723_v48, %v557_v47 }
 0x2a4   : > { %v566_v51 = vmul.f32 %v565_v46, %v558_v49 }
 0x2a6   : > { %v567_v52 = vadd.f32 %v566_v51, %v564_v50 }
 0x2a8   : > { %568 = vst [vmem:[%s329_s17] sm:$0xff] %v567_v52 }
 0x2a9   : > { %854 = shalt.err (!%p851_p2)
}
 0x2aa   : > { %s855_s12 = scalar_lea.hbm %s581_s19, 128  ;;  %s859_s11 = scalar_lea.hbm %s1133_s6, 256 }
 0x2ab   : > { %p856_p4 = scmp.ne.s32.totalorder %s581_s19, %s855_s12  ;;  %p860_p0 = scmp.lt.s32.totalorder %s581_s19, %s1133_s6 }
 0x2ac   : > { %p861_p6 = scmp.lt.s32.totalorder %s859_s11, %s855_s12 }
 0x2ad   : > { %p857_p9 = pnand %p856_p4, %p1144_p13 }
 0x2ae   : > { %p862_p11 = por %p861_p6, %p860_p0 }
 0x2af   : > { %p858_p7 = pneg %p857_p9 }
 0x2b1   : > { %p863_p12 = pnand %p862_p11, %p858_p7 }
 0x2b3   : > { %866 = shalt.err (!%p863_p12)
}
 0x2b4   : > { %748 = dma.vmem_to_hbm [thread:$0]  (%p1144_p13), %s584_s29, 128, %s581_s19, %s570_s7  }
 0x2b5 PF: > { %s595_s17 = sand.u32 1, %s893_s21   ;;  %p1145_p1 = scmp.ne.s32.totalorder %s1139_s10, 0 }
 0x2b6   : > { %p1146_p3 = scmp.ge.s32.totalorder %s905_s24, 2  ;;  %s596_s20 = scalar_lea.sflag [#allocation4], %s595_s17 }
 0x2b8   : > { %p755_p5 = pnand %p1146_p3, %p1145_p1 }
 0x2ba   : > { %p756_p8 = pneg %p755_p5 }
 0x2bc   : > { %888 = dma.done.wait (%p756_p8), %s596_s20, 128  }
 0x2bd   : > { %890 = vsyncadd (%p756_p8), %s596_s20, 4294967168  ;;  %p19_p10 = scmp.ge.s32.totalorder %s972_s27, 4   ;;  %s1147_s21 = smov %s897_s22 }
 0x2be   : > { %s1148_s22 = smov %s901_s23  ;;  %s1149_s23 = smov %s984_s30 }
 0x2bf   : > { %s1150_s24 = smov %s972_s27  ;;  %21 = sbr.rel (!%p19_p10) target bundleno = 5 (0x5), region = 104 }
 0x2c4   :  { %601 = vsyncpa [#allocation3], 1 }
 0x2c5   :  { %603 = vsyncpa [#allocation3 + $0x1], 1 }
 0x2c6   :  { %604 = vsyncpa [#allocation4], 1 }
 0x2c7   :  { %606 = vsyncpa [#allocation4 + $0x1], 1 }

</bundles_post_ra>
